<compile_context>
chip_gen: v7x
topology: tpu7x:2x2x1
jax: 0.10.0
libtpu: 0.0.40
codegen_flags: <defaults>
</compile_context>

<pallas_src>
import jax
import jax.numpy as jnp
from jax.experimental import pallas as pl
from jax.experimental.pallas import tpu as pltpu

NEG_SLOPE = 0.01


def _leaky_relu(x, slope=NEG_SLOPE):
    return jnp.where(x >= 0, x, slope * x)


def decoder_kernel(x_ref, w1_ref, b1_ref, w2_ref, b2_ref, w3_ref, b3_ref, o_ref):
    # In-kernel bf16 cast (VPU filler under MXU work); f32 MXU accumulation;
    # bias + leaky_relu stay f32 on the VPU.
    x = x_ref[...].astype(jnp.bfloat16)
    l1 = jnp.dot(x, w1_ref[...], preferred_element_type=jnp.float32)
    l1 = _leaky_relu(l1 + b1_ref[...])
    l2 = jnp.dot(l1.astype(jnp.bfloat16), w2_ref[...],
                 preferred_element_type=jnp.float32)
    l2 = _leaky_relu(l2 + b2_ref[...])
    l3 = jnp.dot(l2.astype(jnp.bfloat16), w3_ref[...],
                 preferred_element_type=jnp.float32)
    l3 = _leaky_relu(l3 + b3_ref[...])
    # Single lane-dense store of the 8F-wide output tile.
    o_ref[...] = l3.astype(o_ref.dtype)


def _round_up(x, m):
    return ((x + m - 1) // m) * m


def _vmem_budget_bytes():
    # Generation-aware VMEM budget: ~80% of per-TC capacity (~100 MiB on
    # v5e/v6e, ~51 MiB on v7x). Conservative fallback if the query fails.
    try:
        cap = int(pltpu.get_tpu_info().vmem_capacity_bytes)
    except Exception:
        cap = 64 * 1024 * 1024
    return int(cap * 0.8)


def _choose_tile_b(B, F, out_itemsize, vmem_budget, weight_bytes):
    """Largest batch tile that fits VMEM, capped so real batches get >=2 steps."""
    F2, F4, F8 = 2 * F, 4 * F, 8 * F
    per_row = (2 * F * 4                 # x tile (f32), double-buffered
               + 2 * F8 * out_itemsize   # out tile, double-buffered
               + (F2 + F4 + F8) * 4)     # f32 intermediates
    avail = max(vmem_budget - weight_bytes, per_row * 8)
    tile_b = min(1024, avail // per_row)
    if B > 16:
        # Ensure >=2 grid steps: megacore sharding (v7x) + pipeline overlap.
        tile_b = min(tile_b, pl.cdiv(B, 2))
    tile_b = min(tile_b, _round_up(B, 8))
    tile_b = max(int(tile_b), 8)
    if tile_b >= 128:
        tile_b = (tile_b // 128) * 128   # MXU-friendly M, clean bf16 packing
    else:
        tile_b = _round_up(tile_b, 8)
    return tile_b


def decoder_forward(x, params, *, tile_b=None, out_dtype=jnp.float32):
    """x: (B, F) f32/bf16. params: w1,b1,w2,b2,w3,b3; wi stored (in, out) bf16."""
    B, F = x.shape
    F2, F4, F8 = 2 * F, 4 * F, 8 * F
    assert params["w1"].shape == (F, F2)
    assert params["w2"].shape == (F2, F4)
    assert params["w3"].shape == (F4, F8)

    weight_bytes = sum(int(p.size) * p.dtype.itemsize for p in params.values())
    vmem_budget = _vmem_budget_bytes()
    out_itemsize = jnp.dtype(out_dtype).itemsize
    if tile_b is None:
        tile_b = _choose_tile_b(B, F, out_itemsize, vmem_budget, weight_bytes)
    tile_b = max(8, _round_up(int(tile_b), 8))

    grid = (pl.cdiv(B, tile_b),)   # ragged final block is masked by Pallas

    # Advisory cost estimate so XLA schedules around the custom call.
    flops = 2 * B * (F * F2 + F2 * F4 + F4 * F8)
    bytes_accessed = (x.size * x.dtype.itemsize + weight_bytes
                      + B * F8 * out_itemsize)
    cost = pl.CostEstimate(flops=flops, transcendentals=0,
                           bytes_accessed=bytes_accessed)

    # TODO(synk): large-F path (F >~ 768 on v7x, ~2x that on v5e/v6e) should
    # N-tile or stream w3 instead of keeping all weights VMEM-resident.

    def _call(weight_pipeline_mode):
        def resident(arr):
            # Grid-invariant weights/biases: constant index_map; single VMEM
            # buffer (no need to double-buffer something that never changes).
            if weight_pipeline_mode is None:
                return pl.BlockSpec(arr.shape, lambda i: (0, 0))
            return pl.BlockSpec(arr.shape, lambda i: (0, 0),
                                pipeline_mode=weight_pipeline_mode)

        return pl.pallas_call(
            decoder_kernel,
            out_shape=jax.ShapeDtypeStruct((B, F8), out_dtype),
            grid_spec=pltpu.PrefetchScalarGridSpec(
                num_scalar_prefetch=0,
                grid=grid,
                in_specs=[
                    pl.BlockSpec((tile_b, F), lambda i: (i, 0)),  # x batch tile
                    resident(params["w1"]), resident(params["b1"]),
                    resident(params["w2"]), resident(params["b2"]),
                    resident(params["w3"]), resident(params["b3"]),
                ],
                out_specs=pl.BlockSpec((tile_b, F8), lambda i: (i, 0)),
            ),
            compiler_params=pltpu.CompilerParams(
                dimension_semantics=("parallel",),
                vmem_limit_bytes=vmem_budget),
            cost_estimate=cost,
        )(x, params["w1"], params["b1"], params["w2"], params["b2"],
          params["w3"], params["b3"])

    try:
        return _call(pl.Buffered(1))
    except Exception:
        # Fallback for environments where Buffered(1) is not accepted: use the
        # default (double-buffered) pipelining for the resident weights.
        return _call(None)


def xavier_uniform(key, fan_in, fan_out, dtype=jnp.bfloat16):
    # Matches torch.nn.init.xavier_uniform_ bound; stored (in, out) so the
    # kernel computes y = x @ W + b. Weights stored bf16 (MXU-native).
    bound = (6.0 / (fan_in + fan_out)) ** 0.5
    w = jax.random.uniform(key, (fan_in, fan_out), jnp.float32, -bound, bound)
    return w.astype(dtype)


def init_decoder_params(key, feature_dim):
    k1, k2, k3 = jax.random.split(key, 3)
    F = feature_dim
    return {
        "w1": xavier_uniform(k1, F, 2 * F),
        "b1": jnp.zeros((1, 2 * F), jnp.float32),
        "w2": xavier_uniform(k2, 2 * F, 4 * F),
        "b2": jnp.zeros((1, 4 * F), jnp.float32),
        "w3": xavier_uniform(k3, 4 * F, 8 * F),
        "b3": jnp.zeros((1, 8 * F), jnp.float32),
    }


def decoder_reference(x, p):
    # Reference mirrors the kernel's numerics: bf16 MXU inputs, f32 accum.
    l1 = _leaky_relu(jnp.dot(x.astype(jnp.bfloat16), p["w1"],
                             preferred_element_type=jnp.float32) + p["b1"])
    l2 = _leaky_relu(jnp.dot(l1.astype(jnp.bfloat16), p["w2"],
                             preferred_element_type=jnp.float32) + p["b2"])
    l3 = _leaky_relu(jnp.dot(l2.astype(jnp.bfloat16), p["w3"],
                             preferred_element_type=jnp.float32) + p["b3"])
    return l3


if __name__ == "__main__":
    key = jax.random.PRNGKey(0)
    kx, kx2, kp = jax.random.split(key, 3)

    feature_dim = 32
    params = init_decoder_params(kp, feature_dim)

    # Small exact-tile case.
    x = jax.random.normal(kx, (8, feature_dim), jnp.float32)
    out = jax.block_until_ready(decoder_forward(x, params))
    ref = decoder_reference(x, params)
    assert out.shape == (8, 8 * feature_dim)
    assert jnp.allclose(out, ref, atol=1e-2, rtol=1e-2), "mismatch vs reference"

    # Multi-block + ragged-final-block case (exercises the cdiv grid masking).
    x2 = jax.random.normal(kx2, (200, feature_dim), jnp.float32)
    out2 = jax.block_until_ready(decoder_forward(x2, params))
    ref2 = decoder_reference(x2, params)
    assert out2.shape == (200, 8 * feature_dim)
    assert jnp.allclose(out2, ref2, atol=1e-2, rtol=1e-2), "mismatch vs reference (ragged)"

    print("KERNEL_OK")
</pallas_src>

<mosaic_0001>
module attributes {stable_mosaic.version = 11 : i64} {
  func.func @decoder_kernel(%arg0: i32, %arg1: memref<8x32xf32, #tpu.memory_space<vmem>>, %arg2: memref<32x64xbf16, #tpu.memory_space<vmem>>, %arg3: memref<1x64xf32, #tpu.memory_space<vmem>>, %arg4: memref<64x128xbf16, #tpu.memory_space<vmem>>, %arg5: memref<1x128xf32, #tpu.memory_space<vmem>>, %arg6: memref<128x256xbf16, #tpu.memory_space<vmem>>, %arg7: memref<1x256xf32, #tpu.memory_space<vmem>>, %arg8: memref<8x256xf32, #tpu.memory_space<vmem>>) attributes {dimension_semantics = [#tpu.dimension_semantics<parallel>], iteration_bounds = array<i64: 1>, scalar_prefetch = 0 : i64, scratch_operands = 0 : i64, tpu.core_type = #tpu.core_type<tc>, window_params = [{transform_indices = @transform_0, window_bounds = array<i64: 8, 32>}, {pipeline_mode = #tpu.pipeline_mode<synchronous>, transform_indices = @transform_1, window_bounds = array<i64: 32, 64>}, {pipeline_mode = #tpu.pipeline_mode<synchronous>, transform_indices = @transform_2, window_bounds = array<i64: 1, 64>}, {pipeline_mode = #tpu.pipeline_mode<synchronous>, transform_indices = @transform_3, window_bounds = array<i64: 64, 128>}, {pipeline_mode = #tpu.pipeline_mode<synchronous>, transform_indices = @transform_4, window_bounds = array<i64: 1, 128>}, {pipeline_mode = #tpu.pipeline_mode<synchronous>, transform_indices = @transform_5, window_bounds = array<i64: 128, 256>}, {pipeline_mode = #tpu.pipeline_mode<synchronous>, transform_indices = @transform_6, window_bounds = array<i64: 1, 256>}, {transform_indices = @transform_7, window_bounds = array<i64: 8, 256>}]} {
    %c0 = arith.constant 0 : index
    %c0_0 = arith.constant 0 : index
    %0 = vector.load %arg1[%c0, %c0_0] : memref<8x32xf32, #tpu.memory_space<vmem>>, vector<8x32xf32>
    %1 = arith.truncf %0 : vector<8x32xf32> to vector<8x32xbf16>
    %c0_1 = arith.constant 0 : index
    %c0_2 = arith.constant 0 : index
    %2 = vector.load %arg2[%c0_1, %c0_2] : memref<32x64xbf16, #tpu.memory_space<vmem>>, vector<32x64xbf16>
    %cst = arith.constant dense<0.000000e+00> : vector<8x64xf32>
    %3 = tpu.matmul %1, %2, %cst {dimension_numbers = #tpu.dot_dimension_numbers<[1], [0], [0], [1], [0, 0, 1, 1], [], []>} : vector<8x32xbf16>, vector<32x64xbf16>, vector<8x64xf32> -> vector<8x64xf32>
    %c0_3 = arith.constant 0 : index
    %c0_4 = arith.constant 0 : index
    %4 = vector.load %arg3[%c0_3, %c0_4] : memref<1x64xf32, #tpu.memory_space<vmem>>, vector<1x64xf32>
    %5 = vector.broadcast %4 : vector<1x64xf32> to vector<8x64xf32>
    %6 = arith.addf %3, %5 : vector<8x64xf32>
    %cst_5 = arith.constant 0.000000e+00 : f32
    %7 = vector.broadcast %cst_5 : f32 to vector<8x64xf32>
    %8 = arith.cmpf oge, %6, %7 : vector<8x64xf32>
    %cst_6 = arith.constant 0.00999999977 : f32
    %9 = vector.broadcast %cst_6 : f32 to vector<8x64xf32>
    %10 = arith.mulf %9, %6 : vector<8x64xf32>
    %11 = arith.select %8, %6, %10 : vector<8x64xi1>, vector<8x64xf32>
    %12 = arith.truncf %11 : vector<8x64xf32> to vector<8x64xbf16>
    %c0_7 = arith.constant 0 : index
    %c0_8 = arith.constant 0 : index
    %13 = vector.load %arg4[%c0_7, %c0_8] : memref<64x128xbf16, #tpu.memory_space<vmem>>, vector<64x128xbf16>
    %cst_9 = arith.constant dense<0.000000e+00> : vector<8x128xf32>
    %14 = tpu.matmul %12, %13, %cst_9 {dimension_numbers = #tpu.dot_dimension_numbers<[1], [0], [0], [1], [0, 0, 1, 1], [], []>} : vector<8x64xbf16>, vector<64x128xbf16>, vector<8x128xf32> -> vector<8x128xf32>
    %c0_10 = arith.constant 0 : index
    %c0_11 = arith.constant 0 : index
    %15 = vector.load %arg5[%c0_10, %c0_11] : memref<1x128xf32, #tpu.memory_space<vmem>>, vector<1x128xf32>
    %16 = vector.broadcast %15 : vector<1x128xf32> to vector<8x128xf32>
    %17 = arith.addf %14, %16 : vector<8x128xf32>
    %cst_12 = arith.constant 0.000000e+00 : f32
    %18 = vector.broadcast %cst_12 : f32 to vector<8x128xf32>
    %19 = arith.cmpf oge, %17, %18 : vector<8x128xf32>
    %cst_13 = arith.constant 0.00999999977 : f32
    %20 = vector.broadcast %cst_13 : f32 to vector<8x128xf32>
    %21 = arith.mulf %20, %17 : vector<8x128xf32>
    %22 = arith.select %19, %17, %21 : vector<8x128xi1>, vector<8x128xf32>
    %23 = arith.truncf %22 : vector<8x128xf32> to vector<8x128xbf16>
    %c0_14 = arith.constant 0 : index
    %c0_15 = arith.constant 0 : index
    %24 = vector.load %arg6[%c0_14, %c0_15] : memref<128x256xbf16, #tpu.memory_space<vmem>>, vector<128x256xbf16>
    %cst_16 = arith.constant dense<0.000000e+00> : vector<8x256xf32>
    %25 = tpu.matmul %23, %24, %cst_16 {dimension_numbers = #tpu.dot_dimension_numbers<[1], [0], [0], [1], [0, 0, 1, 1], [], []>} : vector<8x128xbf16>, vector<128x256xbf16>, vector<8x256xf32> -> vector<8x256xf32>
    %c0_17 = arith.constant 0 : index
    %c0_18 = arith.constant 0 : index
    %26 = vector.load %arg7[%c0_17, %c0_18] : memref<1x256xf32, #tpu.memory_space<vmem>>, vector<1x256xf32>
    %27 = vector.broadcast %26 : vector<1x256xf32> to vector<8x256xf32>
    %28 = arith.addf %25, %27 : vector<8x256xf32>
    %cst_19 = arith.constant 0.000000e+00 : f32
    %29 = vector.broadcast %cst_19 : f32 to vector<8x256xf32>
    %30 = arith.cmpf oge, %28, %29 : vector<8x256xf32>
    %cst_20 = arith.constant 0.00999999977 : f32
    %31 = vector.broadcast %cst_20 : f32 to vector<8x256xf32>
    %32 = arith.mulf %31, %28 : vector<8x256xf32>
    %33 = arith.select %30, %28, %32 : vector<8x256xi1>, vector<8x256xf32>
    %c0_21 = arith.constant 0 : index
    %c0_22 = arith.constant 0 : index
    %34 = vector.load %arg8[%c0_21, %c0_22] : memref<8x256xf32, #tpu.memory_space<vmem>>, vector<8x256xf32>
    tpu.vector_store %arg8[%c0_21, %c0_22], %33 {strides = array<i32>} : memref<8x256xf32, #tpu.memory_space<vmem>>, vector<8x256xf32>,
    return
  }
  func.func @transform_0(%arg0: i32) -> (i32, i32) {
    %c0_i32 = arith.constant 0 : i32
    %c0_i32_0 = arith.constant 0 : i32
    return %arg0, %c0_i32 : i32, i32
  }
  func.func @transform_1(%arg0: i32) -> (i32, i32) {
    %c0_i32 = arith.constant 0 : i32
    %c0_i32_0 = arith.constant 0 : i32
    %c0_i32_1 = arith.constant 0 : i32
    return %c0_i32, %c0_i32_0 : i32, i32
  }
  func.func @transform_2(%arg0: i32) -> (i32, i32) {
    %c0_i32 = arith.constant 0 : i32
    %c0_i32_0 = arith.constant 0 : i32
    %c0_i32_1 = arith.constant 0 : i32
    return %c0_i32, %c0_i32_0 : i32, i32
  }
  func.func @transform_3(%arg0: i32) -> (i32, i32) {
    %c0_i32 = arith.constant 0 : i32
    %c0_i32_0 = arith.constant 0 : i32
    %c0_i32_1 = arith.constant 0 : i32
    return %c0_i32, %c0_i32_0 : i32, i32
  }
  func.func @transform_4(%arg0: i32) -> (i32, i32) {
    %c0_i32 = arith.constant 0 : i32
    %c0_i32_0 = arith.constant 0 : i32
    %c0_i32_1 = arith.constant 0 : i32
    return %c0_i32, %c0_i32_0 : i32, i32
  }
  func.func @transform_5(%arg0: i32) -> (i32, i32) {
    %c0_i32 = arith.constant 0 : i32
    %c0_i32_0 = arith.constant 0 : i32
    %c0_i32_1 = arith.constant 0 : i32
    return %c0_i32, %c0_i32_0 : i32, i32
  }
  func.func @transform_6(%arg0: i32) -> (i32, i32) {
    %c0_i32 = arith.constant 0 : i32
    %c0_i32_0 = arith.constant 0 : i32
    %c0_i32_1 = arith.constant 0 : i32
    return %c0_i32, %c0_i32_0 : i32, i32
  }
  func.func @transform_7(%arg0: i32) -> (i32, i32) {
    %c0_i32 = arith.constant 0 : i32
    %c0_i32_0 = arith.constant 0 : i32
    return %arg0, %c0_i32 : i32, i32
  }
}

module attributes {stable_mosaic.version = 11 : i64} {
  func.func @decoder_kernel(%arg0: i32, %arg1: memref<8x32xf32, #tpu.memory_space<vmem>>, %arg2: memref<32x64xbf16, #tpu.memory_space<vmem>>, %arg3: memref<1x64xf32, #tpu.memory_space<vmem>>, %arg4: memref<64x128xbf16, #tpu.memory_space<vmem>>, %arg5: memref<1x128xf32, #tpu.memory_space<vmem>>, %arg6: memref<128x256xbf16, #tpu.memory_space<vmem>>, %arg7: memref<1x256xf32, #tpu.memory_space<vmem>>, %arg8: memref<8x256xf32, #tpu.memory_space<vmem>>) attributes {dimension_semantics = [#tpu.dimension_semantics<parallel>], iteration_bounds = array<i64: 1>, scalar_prefetch = 0 : i64, scratch_operands = 0 : i64, tpu.core_type = #tpu.core_type<tc>, window_params = [{transform_indices = @transform_0, window_bounds = array<i64: 8, 32>}, {pipeline_mode = #tpu.pipeline_mode<synchronous>, transform_indices = @transform_1, window_bounds = array<i64: 32, 64>}, {pipeline_mode = #tpu.pipeline_mode<synchronous>, transform_indices = @transform_2, window_bounds = array<i64: 1, 64>}, {pipeline_mode = #tpu.pipeline_mode<synchronous>, transform_indices = @transform_3, window_bounds = array<i64: 64, 128>}, {pipeline_mode = #tpu.pipeline_mode<synchronous>, transform_indices = @transform_4, window_bounds = array<i64: 1, 128>}, {pipeline_mode = #tpu.pipeline_mode<synchronous>, transform_indices = @transform_5, window_bounds = array<i64: 128, 256>}, {pipeline_mode = #tpu.pipeline_mode<synchronous>, transform_indices = @transform_6, window_bounds = array<i64: 1, 256>}, {transform_indices = @transform_7, window_bounds = array<i64: 8, 256>}]} {
    %c0 = arith.constant 0 : index
    %c0_0 = arith.constant 0 : index
    %0 = vector.load %arg1[%c0, %c0_0] : memref<8x32xf32, #tpu.memory_space<vmem>>, vector<8x32xf32>
    %1 = arith.truncf %0 : vector<8x32xf32> to vector<8x32xbf16>
    %c0_1 = arith.constant 0 : index
    %c0_2 = arith.constant 0 : index
    %2 = vector.load %arg2[%c0_1, %c0_2] : memref<32x64xbf16, #tpu.memory_space<vmem>>, vector<32x64xbf16>
    %cst = arith.constant dense<0.000000e+00> : vector<8x64xf32>
    %3 = tpu.matmul %1, %2, %cst {dimension_numbers = #tpu.dot_dimension_numbers<[1], [0], [0], [1], [0, 0, 1, 1], [], []>} : vector<8x32xbf16>, vector<32x64xbf16>, vector<8x64xf32> -> vector<8x64xf32>
    %c0_3 = arith.constant 0 : index
    %c0_4 = arith.constant 0 : index
    %4 = vector.load %arg3[%c0_3, %c0_4] : memref<1x64xf32, #tpu.memory_space<vmem>>, vector<1x64xf32>
    %5 = vector.broadcast %4 : vector<1x64xf32> to vector<8x64xf32>
    %6 = arith.addf %3, %5 : vector<8x64xf32>
    %cst_5 = arith.constant 0.000000e+00 : f32
    %7 = vector.broadcast %cst_5 : f32 to vector<8x64xf32>
    %8 = arith.cmpf oge, %6, %7 : vector<8x64xf32>
    %cst_6 = arith.constant 0.00999999977 : f32
    %9 = vector.broadcast %cst_6 : f32 to vector<8x64xf32>
    %10 = arith.mulf %9, %6 : vector<8x64xf32>
    %11 = arith.select %8, %6, %10 : vector<8x64xi1>, vector<8x64xf32>
    %12 = arith.truncf %11 : vector<8x64xf32> to vector<8x64xbf16>
    %c0_7 = arith.constant 0 : index
    %c0_8 = arith.constant 0 : index
    %13 = vector.load %arg4[%c0_7, %c0_8] : memref<64x128xbf16, #tpu.memory_space<vmem>>, vector<64x128xbf16>
    %cst_9 = arith.constant dense<0.000000e+00> : vector<8x128xf32>
    %14 = tpu.matmul %12, %13, %cst_9 {dimension_numbers = #tpu.dot_dimension_numbers<[1], [0], [0], [1], [0, 0, 1, 1], [], []>} : vector<8x64xbf16>, vector<64x128xbf16>, vector<8x128xf32> -> vector<8x128xf32>
    %c0_10 = arith.constant 0 : index
    %c0_11 = arith.constant 0 : index
    %15 = vector.load %arg5[%c0_10, %c0_11] : memref<1x128xf32, #tpu.memory_space<vmem>>, vector<1x128xf32>
    %16 = vector.broadcast %15 : vector<1x128xf32> to vector<8x128xf32>
    %17 = arith.addf %14, %16 : vector<8x128xf32>
    %cst_12 = arith.constant 0.000000e+00 : f32
    %18 = vector.broadcast %cst_12 : f32 to vector<8x128xf32>
    %19 = arith.cmpf oge, %17, %18 : vector<8x128xf32>
    %cst_13 = arith.constant 0.00999999977 : f32
    %20 = vector.broadcast %cst_13 : f32 to vector<8x128xf32>
    %21 = arith.mulf %20, %17 : vector<8x128xf32>
    %22 = arith.select %19, %17, %21 : vector<8x128xi1>, vector<8x128xf32>
    %23 = arith.truncf %22 : vector<8x128xf32> to vector<8x128xbf16>
    %c0_14 = arith.constant 0 : index
    %c0_15 = arith.constant 0 : index
    %24 = vector.load %arg6[%c0_14, %c0_15] : memref<128x256xbf16, #tpu.memory_space<vmem>>, vector<128x256xbf16>
    %cst_16 = arith.constant dense<0.000000e+00> : vector<8x256xf32>
    %25 = tpu.matmul %23, %24, %cst_16 {dimension_numbers = #tpu.dot_dimension_numbers<[1], [0], [0], [1], [0, 0, 1, 1], [], []>} : vector<8x128xbf16>, vector<128x256xbf16>, vector<8x256xf32> -> vector<8x256xf32>
    %c0_17 = arith.constant 0 : index
    %c0_18 = arith.constant 0 : index
    %26 = vector.load %arg7[%c0_17, %c0_18] : memref<1x256xf32, #tpu.memory_space<vmem>>, vector<1x256xf32>
    %27 = vector.broadcast %26 : vector<1x256xf32> to vector<8x256xf32>
    %28 = arith.addf %25, %27 : vector<8x256xf32>
    %cst_19 = arith.constant 0.000000e+00 : f32
    %29 = vector.broadcast %cst_19 : f32 to vector<8x256xf32>
    %30 = arith.cmpf oge, %28, %29 : vector<8x256xf32>
    %cst_20 = arith.constant 0.00999999977 : f32
    %31 = vector.broadcast %cst_20 : f32 to vector<8x256xf32>
    %32 = arith.mulf %31, %28 : vector<8x256xf32>
    %33 = arith.select %30, %28, %32 : vector<8x256xi1>, vector<8x256xf32>
    %c0_21 = arith.constant 0 : index
    %c0_22 = arith.constant 0 : index
    %34 = vector.load %arg8[%c0_21, %c0_22] : memref<8x256xf32, #tpu.memory_space<vmem>>, vector<8x256xf32>
    tpu.vector_store %arg8[%c0_21, %c0_22], %33 {strides = array<i32>} : memref<8x256xf32, #tpu.memory_space<vmem>>, vector<8x256xf32>,
    return
  }
  func.func @transform_0(%arg0: i32) -> (i32, i32) {
    %c0_i32 = arith.constant 0 : i32
    %c0_i32_0 = arith.constant 0 : i32
    return %arg0, %c0_i32 : i32, i32
  }
  func.func @transform_1(%arg0: i32) -> (i32, i32) {
    %c0_i32 = arith.constant 0 : i32
    %c0_i32_0 = arith.constant 0 : i32
    %c0_i32_1 = arith.constant 0 : i32
    return %c0_i32, %c0_i32_0 : i32, i32
  }
  func.func @transform_2(%arg0: i32) -> (i32, i32) {
    %c0_i32 = arith.constant 0 : i32
    %c0_i32_0 = arith.constant 0 : i32
    %c0_i32_1 = arith.constant 0 : i32
    return %c0_i32, %c0_i32_0 : i32, i32
  }
  func.func @transform_3(%arg0: i32) -> (i32, i32) {
    %c0_i32 = arith.constant 0 : i32
    %c0_i32_0 = arith.constant 0 : i32
    %c0_i32_1 = arith.constant 0 : i32
    return %c0_i32, %c0_i32_0 : i32, i32
  }
  func.func @transform_4(%arg0: i32) -> (i32, i32) {
    %c0_i32 = arith.constant 0 : i32
    %c0_i32_0 = arith.constant 0 : i32
    %c0_i32_1 = arith.constant 0 : i32
    return %c0_i32, %c0_i32_0 : i32, i32
  }
  func.func @transform_5(%arg0: i32) -> (i32, i32) {
    %c0_i32 = arith.constant 0 : i32
    %c0_i32_0 = arith.constant 0 : i32
    %c0_i32_1 = arith.constant 0 : i32
    return %c0_i32, %c0_i32_0 : i32, i32
  }
  func.func @transform_6(%arg0: i32) -> (i32, i32) {
    %c0_i32 = arith.constant 0 : i32
    %c0_i32_0 = arith.constant 0 : i32
    %c0_i32_1 = arith.constant 0 : i32
    return %c0_i32, %c0_i32_0 : i32, i32
  }
  func.func @transform_7(%arg0: i32) -> (i32, i32) {
    %c0_i32 = arith.constant 0 : i32
    %c0_i32_0 = arith.constant 0 : i32
    return %arg0, %c0_i32 : i32, i32
  }
}

</mosaic_0001>

<bundles_post_ra>
// kernel: tpu_custom_call.1
= control target key start
LH: loop header
LB: loop body
LE: loop exit
PB: predicated region body
PF: predicated region fallthrough
CT: control target
= control target key end

     0   :  { %12 = vsyncpa [#allocation3], 0  ;;  %s756_s0 = inlined_call_operand.hbm [shape: f32[8,32], index: 0, kind: input, shape index: {}]   ;;  %s757_s1 = inlined_call_operand.hbm [shape: bf16[32,64], index: 1, kind: input, shape index: {}]   ;;  %s758_s2 = inlined_call_operand.vmem [shape: f32[1,64], index: 2, kind: input, shape index: {}]   ;;  %s759_s3 = inlined_call_operand.hbm [shape: bf16[64,128], index: 3, kind: input, shape index: {}]   ;;  %s760_s4 = inlined_call_operand.vmem [shape: f32[1,128], index: 4, kind: input, shape index: {}]   ;;  %s761_s5 = inlined_call_operand.hbm [shape: bf16[128,256], index: 5, kind: input, shape index: {}]   ;;  %s762_s6 = inlined_call_operand.vmem [shape: f32[1,256], index: 6, kind: input, shape index: {}]   ;;  %s763_s7 = inlined_call_operand.hbm [shape: f32[8,256], index: 7, kind: output, shape index: {}]  }
   0x1   :  { %13 = vsyncpa [#allocation6], 0 }
   0x2   :  { %14 = vsyncpa [#allocation9], 0 }
   0x3   :  { %15 = vsyncpa [#allocation4], 0  ;;  %s629_s24 = smov [#allocation5]   ;;  %s511_s28 = scalar_lea.hbm %s757_s1, 256 }
   0x4   :  { %s31_s25 = sshll.u32 %s629_s24, 4  ;;  %p512_p0 = scmp.ne.s32.totalorder %s757_s1, %s511_s28  ;;  %s32_s25 = int_to_ptr.vmem [resolvable:$true] %s31_s25 }
   0x5   :  { %p515_p1 = scmp.lt.u32.totalorder %s511_s28, %s757_s1 }
   0x7   :  { %p517_p2 = pnand %p515_p1, %p512_p0 }
   0x9   :  { %520 = shalt.err (!%p517_p2)
}
   0xa   :  { %s521_s10 = scalar_lea.vmem %s32_s25, 256  ;;  %p526_p4 = scmp.lt.s32.totalorder %s32_s25, %s32_s25 }
   0xb   :  { %p522_p3 = scmp.ne.s32.totalorder %s32_s25, %s521_s10  ;;  %p527_p5 = scmp.lt.s32.totalorder %s521_s10, %s521_s10 }
   0xd   :  { %p528_p6 = por %p527_p5, %p526_p4 }
   0xf   :  { %p529_p7 = pnand %p528_p6, %p522_p3 }
  0x11   :  { %532 = shalt.err (!%p529_p7)
}
  0x12   :  { %s630_s11 = smov 64   ;;  %s631_s12 = smov 4  }
  0x13   :  { %37 = dma.hbm_to_vmem [thread:$0]  %s757_s1, 256, %s32_s25, [#allocation6], %s630_s11, %s630_s11, %s631_s12  }
  0x14   :  { %s632_s15 = smov [#allocation2]   ;;  %s633_s17 = smov [#allocation7]  }
  0x15   :  { %s22_s16 = sshll.u32 %s632_s15, 4  ;;  %s45_s18 = sshll.u32 %s633_s17, 4  ;;  %s23_s16 = int_to_ptr.vmem [resolvable:$true] %s22_s16  ;;  %s46_s18 = int_to_ptr.vmem [resolvable:$true] %s45_s18 }
  0x16   :  { %s533_s21 = scalar_lea.hbm %s756_s0, 128 }
  0x17   :  { %p534_p8 = scmp.ne.s32.totalorder %s756_s0, %s533_s21  ;;  %p537_p9 = scmp.lt.u32.totalorder %s533_s21, %s756_s0 }
  0x19   :  { %p539_p10 = pnand %p537_p9, %p534_p8 }
  0x1b   :  { %542 = shalt.err (!%p539_p10)
}
  0x1c   :  { %s543_s1 = scalar_lea.vmem %s23_s16, 128  ;;  %p548_p12 = scmp.lt.s32.totalorder %s23_s16, %s23_s16 }
  0x1d   :  { %p544_p11 = scmp.ne.s32.totalorder %s23_s16, %s543_s1  ;;  %p549_p13 = scmp.lt.s32.totalorder %s543_s1, %s543_s1 }
  0x1f   :  { %p550_p0 = por %p549_p13, %p548_p12 }
  0x21   :  { %p551_p1 = pnand %p550_p0, %p544_p11 }
  0x23   :  { %554 = shalt.err (!%p551_p1)
}
  0x24   :  { %25 = dma.hbm_to_vmem [thread:$0]  %s756_s0, 128, %s23_s16, [#allocation3]  }
  0x25   :  { %s555_s30 = scalar_lea.hbm %s759_s3, 512 }
  0x26   :  { %p556_p2 = scmp.ne.s32.totalorder %s759_s3, %s555_s30  ;;  %p559_p3 = scmp.lt.u32.totalorder %s555_s30, %s759_s3 }
  0x28   :  { %p561_p4 = pnand %p559_p3, %p556_p2 }
  0x2a   :  { %564 = shalt.err (!%p561_p4)
}
  0x2b   :  { %s565_s14 = scalar_lea.vmem %s46_s18, 512  ;;  %p570_p6 = scmp.lt.s32.totalorder %s46_s18, %s46_s18 }
  0x2c   :  { %p566_p5 = scmp.ne.s32.totalorder %s46_s18, %s565_s14  ;;  %p571_p7 = scmp.lt.s32.totalorder %s565_s14, %s565_s14 }
  0x2e   :  { %p572_p8 = por %p571_p7, %p570_p6 }
  0x30   :  { %p573_p9 = pnand %p572_p8, %p566_p5 }
  0x32   :  { %576 = shalt.err (!%p573_p9)
}
  0x33   :  { %51 = dma.hbm_to_vmem [thread:$0]  %s759_s3, 512, %s46_s18, [#allocation6], %s630_s11, %s630_s11, %s631_s12  }
  0x34   :  { %s634_s16 = smov [#allocation8]   ;;  %s577_s21 = scalar_lea.hbm %s761_s5, 2048 }
  0x35   :  { %s59_s17 = sshll.u32 %s634_s16, 4  ;;  %p578_p10 = scmp.ne.s32.totalorder %s761_s5, %s577_s21  ;;  %s60_s17 = int_to_ptr.vmem [resolvable:$true] %s59_s17 }
  0x36   :  { %p581_p11 = scmp.lt.u32.totalorder %s577_s21, %s761_s5 }
  0x38   :  { %p583_p12 = pnand %p581_p11, %p578_p10 }
  0x3a   :  { %586 = shalt.err (!%p583_p12)
}
  0x3b   :  { %s587_s1 = scalar_lea.vmem %s60_s17, 2048  ;;  %p592_p0 = scmp.lt.s32.totalorder %s60_s17, %s60_s17 }
  0x3c   :  { %p588_p13 = scmp.ne.s32.totalorder %s60_s17, %s587_s1  ;;  %p593_p1 = scmp.lt.s32.totalorder %s587_s1, %s587_s1 }
  0x3e   :  { %p594_p2 = por %p593_p1, %p592_p0 }
  0x40   :  { %p595_p3 = pnand %p594_p2, %p588_p13 }
  0x42   :  { %598 = shalt.err (!%p595_p3)
}
  0x43   :  { %s635_s3 = smov 128   ;;  %s636_s11 = smov 8  }
  0x44   :  { %65 = dma.hbm_to_vmem [thread:$0]  %s761_s5, 2048, %s60_s17, [#allocation9], %s635_s3, %s635_s3, %s636_s11  }
  0x45   :  { %621 = dma.done.wait [#allocation3], 128  }
  0x46   :  { %622 = vsyncadd [#allocation3], 4294967168 }
  0x47   :  { %623 = dma.done.wait [#allocation6], 768  }
  0x48   :  { %624 = vsyncadd [#allocation6], 4294966528 }
  0x49   :  { %625 = dma.done.wait [#allocation9], 2048  }
  0x4a   :  { %626 = vsyncadd [#allocation9], 4294965248  ;;  %v637_v0 = vmov 0.0   ;;  %vm638_vm0 = vmmov 0   ;;  %v481_v1 = vld [vmem:[#allocation5] sm:$0xff]   ;;  %v482_v2 = vld [vmem:[#allocation5 + $0x8] sm:$0xff]   ;;  %v259_v44 = vlaneseq }
  0x4b   :  { %449 = vmatprep.subr.bf16.mxu1 %v637_v0  ;;  %453 = vmatprep.mubr.msk.bf16.mxu1 %vm638_vm0, %v637_v0  ;;  %v81_v3 = vld [vmem:[#allocation2] sm:$0xff]  ;;  %v483_v4 = vld [vmem:[#allocation7] sm:$0xff]   ;;  %vm106_vm1 = vcmask 261120   ;;  %v485_v7 = vld [vmem:[#allocation7 + $0x10] sm:$0xff]   ;;  %vm193_vm3 = vcmask 523264   ;;  %v639_v34 = vmov 0  }
  0x4c   :  { %450 = vmatpush3.bf16.msra.mxu1 %v481_v1  ;;  %v82_v5 = vpack.c.bf16 %v81_v3, %v81_v3  ;;  %v484_v6 = vld [vmem:[#allocation7 + $0x8] sm:$0xff]   ;;  %v486_v8 = vld [vmem:[#allocation7 + $0x18] sm:$0xff]   ;;  %381 = vmatprep.mubr.bf16.mxu0 %v639_v34  ;;  %v260_v45 = vshrl.u32 %v259_v44, 7 }
  0x4d   :  { %451 = vmatprep.subr.bf16.mxu1 %v637_v0  ;;  %v487_v9 = vld [vmem:[#allocation8 + $0x4] ss:$8 sps:$4 sm:$0xff]   ;;  %v489_v10 = vld [vmem:[#allocation8] ss:$8 sps:$4 sm:$0xff]   ;;  %v490_v11 = vld [vmem:[#allocation8 + $0x14] ss:$8 sps:$4 sm:$0xff]  }
  0x4e   :  { %349 = vmatprep.subr.bf16.mxu0 %v487_v9  ;;  %v492_v12 = vld [vmem:[#allocation8 + $0x10] ss:$8 sps:$4 sm:$0xff]   ;;  %v493_v13 = vld [vmem:[#allocation8 + $0x24] ss:$8 sps:$4 sm:$0xff]   ;;  %v495_v14 = vld [vmem:[#allocation8 + $0x20] ss:$8 sps:$4 sm:$0xff]  }
  0x4f   :  { %350 = vmatpush1.bf16.msra.mxu0 %v489_v10  ;;  %v496_v15 = vld [vmem:[#allocation8 + $0x34] ss:$8 sps:$4 sm:$0xff]   ;;  %v498_v16 = vld [vmem:[#allocation8 + $0x30] ss:$8 sps:$4 sm:$0xff]   ;;  %v499_v17 = vld [vmem:[#allocation8 + $0x44] ss:$8 sps:$4 sm:$0xff]  }
  0x50   :  { %452 = vmatpush3.bf16.msra.mxu1 %v482_v2  ;;  %351 = vmatprep.subr.bf16.mxu0 %v490_v11  ;;  %v501_v18 = vld [vmem:[#allocation8 + $0x40] ss:$8 sps:$4 sm:$0xff]   ;;  %v502_v19 = vld [vmem:[#allocation8 + $0x54] ss:$8 sps:$4 sm:$0xff]   ;;  %v504_v20 = vld [vmem:[#allocation8 + $0x50] ss:$8 sps:$4 sm:$0xff]  }
  0x51   :  { %457 = vmatprep.subr.bf16.mxu1 %v637_v0  ;;  %v415_v21 = vld [vmem:[%s758_s2] ss:$0 sm:$0xff]  ;;  %v505_v30 = vld [vmem:[#allocation8 + $0x64] ss:$8 sps:$4 sm:$0xff]   ;;  %v508_v32 = vld [vmem:[#allocation8 + $0x74] ss:$8 sps:$4 sm:$0xff]  }
  0x52   :  { %v507_v31 = vld [vmem:[#allocation8 + $0x60] ss:$8 sps:$4 sm:$0xff]   ;;  %v510_v33 = vld [vmem:[#allocation8 + $0x70] ss:$8 sps:$4 sm:$0xff]   ;;  %v261_v46 = vsub.s32 0, %v260_v45  ;;  %v265_v48 = vsub.s32 1, %v260_v45 }
  0x53   :  { %454 = vmatmul.mubr.msk.bf16.vlgmr.msra.gmra.mrb[0].mxu1 %vm106_vm1, %v82_v5  ;;  %352 = vmatpush1.bf16.msra.mxu0 %v492_v12  ;;  %v419_v35 = vld [vmem:[%s760_s4] ss:$0 sm:$0xff]  ;;  %s640_s4 = smov [#allocation10]  }
  0x54   :  { %458 = vmatpush3.bf16.msra.mxu1 %v483_v4  ;;  %465 = vmatprep.mubr.msk.bf16.mxu1 %vm638_vm0, %v637_v0  ;;  %v257_v47 = vld [vmem:[%s762_s6] sm:$0x3]  ;;  %s404_s30 = sshll.u32 %s640_s4, 4  ;;  %s405_s30 = int_to_ptr.vmem [resolvable:$true] %s404_s30 }
  0x55   :  { %459 = vmatprep.subr.bf16.mxu1 %v637_v0  ;;  %353 = vmatprep.subr.bf16.mxu0 %v493_v13  ;;  %v262_v49 = vrot.slane %v257_v47, %v261_v46  ;;  %v266_v50 = vrot.slane %v257_v47, %v265_v48  ;;  %s599_s6 = scalar_lea.vmem %s405_s30, 256  ;;  %p604_p5 = scmp.lt.s32.totalorder %s405_s30, %s405_s30 }
  0x56   :  { %p600_p4 = scmp.ne.s32.totalorder %s405_s30, %s599_s6  ;;  %p605_p6 = scmp.lt.s32.totalorder %s599_s6, %s599_s6 }
  0x57   :  { %354 = vmatpush1.bf16.msra.mxu0 %v495_v14 }
  0x58   :  { %460 = vmatpush3.bf16.msra.mxu1 %v484_v6  ;;  %355 = vmatprep.subr.bf16.mxu0 %v496_v15  ;;  %p606_p7 = por %p605_p6, %p604_p5 }
  0x59   :  { %461 = vmatprep.subr.bf16.mxu1 %v637_v0 }
  0x5a   :  { %p607_p8 = pnand %p606_p7, %p600_p4 }
  0x5b   :  { %356 = vmatpush1.bf16.msra.mxu0 %v498_v16 }
  0x5c   :  { %462 = vmatpush3.bf16.msra.mxu1 %v485_v7  ;;  %357 = vmatprep.subr.bf16.mxu0 %v499_v17 }
  0x5d   :  { %463 = vmatprep.subr.bf16.mxu1 %v637_v0 }
  0x5f   :  { %358 = vmatpush1.bf16.msra.mxu0 %v501_v18 }
  0x60   :  { %464 = vmatpush3.bf16.msra.mxu1 %v486_v8  ;;  %359 = vmatprep.subr.bf16.mxu0 %v502_v19 }
  0x63   :  { %360 = vmatpush1.bf16.msra.mxu0 %v504_v20 }
  0x64   :  { %361 = vmatprep.subr.bf16.mxu0 %v505_v30 }
  0x67   :  { %362 = vmatpush1.bf16.msra.mxu0 %v507_v31 }
  0x68   :  { %363 = vmatprep.subr.bf16.mxu0 %v508_v32 }
  0x6b   :  { %364 = vmatpush1.bf16.msra.mxu0 %v510_v33 }
 0x126   :  { %v144_v22 = vpop.f32.mrb[0].mxu1 }
 0x127   :  { %v145_v23 = vadd.f32 %v415_v21, %v144_v22  ;;  %v455_v24 = vpop.f32.mrb[1].mxu1 }
 0x128   :  { %v147_v25 = vpop.f32.mrb[2].mxu1 }
 0x129   :  { %vm150_vm2 = vcmp.ge.f32.partialorder %v145_v23, 0.0  ;;  %v151_v26 = vmul.f32 0.01, %v145_v23  ;;  %v456_v27 = vpop.f32.mrb[3].mxu1 }
 0x12b   :  { %v152_v28 = vsel %vm150_vm2, %v145_v23, %v151_v26 }
 0x12c   :  { %v153_v29 = vpack.c.bf16 %v152_v28, %v152_v28 }
 0x12e   :  { %466 = vmatmul.mubr.msk.bf16.vlgmr.msra.gmra.mrb[4].mxu1 %vm193_vm3, %v153_v29 }
 0x201   :  { %v231_v36 = vpop.f32.mrb[4].mxu1 }
 0x202   :  { %v232_v37 = vadd.f32 %v419_v35, %v231_v36  ;;  %v467_v38 = vpop.f32.mrb[5].mxu1 }
 0x203   :  { %v234_v39 = vpop.f32.mrb[6].mxu1 }
 0x204   :  { %vm237_vm4 = vcmp.ge.f32.partialorder %v232_v37, 0.0  ;;  %v238_v40 = vmul.f32 0.01, %v232_v37  ;;  %v468_v41 = vpop.f32.mrb[7].mxu1 }
 0x206   :  { %v239_v42 = vsel %vm237_vm4, %v232_v37, %v238_v40 }
 0x207   :  { %v240_v43 = vpack.c.bf16 %v239_v42, %v239_v42 }
 0x209   :  { %382 = vmatmul.mubr.bf16.vlgmr.msra.gmra.mrb[0].mxu0 %v240_v43 }
 0x2dc   :  { %v383_v51 = vpop.f32.mrb[0].mxu0 }
 0x2dd   :  { %v384_v52 = vadd.f32 %v383_v51, %v262_v49  ;;  %v385_v53 = vpop.f32.mrb[1].mxu0 }
 0x2de   :  { %v386_v54 = vadd.f32 %v385_v53, %v266_v50  ;;  %v387_v55 = vpop.f32.mrb[2].mxu0 }
 0x2df   :  { %vm390_vm5 = vcmp.ge.f32.partialorder %v384_v52, 0.0  ;;  %v392_v56 = vmul.f32 0.01, %v384_v52  ;;  %v388_v57 = vpop.f32.mrb[3].mxu0 }
 0x2e0   :  { %vm391_vm6 = vcmp.ge.f32.partialorder %v386_v54, 0.0  ;;  %v393_v58 = vmul.f32 0.01, %v386_v54 }
 0x2e1   :  { %v394_v59 = vsel %vm390_vm5, %v384_v52, %v392_v56 }
 0x2e2   :  { %v395_v60 = vsel %vm391_vm6, %v386_v54, %v393_v58  ;;  %396 = vst [vmem:[#allocation10] sm:$0xff] %v394_v59 }
 0x2e3   :  { %397 = vst [vmem:[#allocation10 + $0x8] sm:$0xff] %v395_v60 }
 0x2e4   :  { %610 = shalt.err (!%p607_p8)
}
 0x2e5   :  { %s611_s10 = scalar_lea.hbm %s763_s7, 256 }
 0x2e6   :  { %p612_p9 = scmp.ne.s32.totalorder %s763_s7, %s611_s10  ;;  %p615_p10 = scmp.lt.u32.totalorder %s611_s10, %s763_s7 }
 0x2e8   :  { %p617_p11 = pnand %p615_p10, %p612_p9 }
 0x2ea   :  { %620 = shalt.err (!%p617_p11)
}
 0x2eb   :  { %407 = dma.vmem_to_hbm [thread:$0]  %s405_s30, 256, %s763_s7, [#allocation4]  }
 0x2ec   :  { %627 = dma.done.wait [#allocation4], 256  }
 0x2ed   :  { %628 = vsyncadd [#allocation4], 4294967040 }
 0x2ee   :  { %411 = vsyncpa [#allocation3], 1 }
 0x2ef   :  { %412 = vsyncpa [#allocation6], 1 }
 0x2f0   :  { %413 = vsyncpa [#allocation9], 1 }
 0x2f1   :  { %414 = vsyncpa [#allocation4], 1 }

// kernel: tpu_custom_call.1
= control target key start
LH: loop header
LB: loop body
LE: loop exit
PB: predicated region body
PF: predicated region fallthrough
CT: control target
= control target key end

     0   :  { %12 = vsyncpa [#allocation3], 0  ;;  %s756_s0 = inlined_call_operand.hbm [shape: f32[8,32], index: 0, kind: input, shape index: {}]   ;;  %s757_s1 = inlined_call_operand.hbm [shape: bf16[32,64], index: 1, kind: input, shape index: {}]   ;;  %s758_s2 = inlined_call_operand.vmem [shape: f32[1,64], index: 2, kind: input, shape index: {}]   ;;  %s759_s3 = inlined_call_operand.hbm [shape: bf16[64,128], index: 3, kind: input, shape index: {}]   ;;  %s760_s4 = inlined_call_operand.vmem [shape: f32[1,128], index: 4, kind: input, shape index: {}]   ;;  %s761_s5 = inlined_call_operand.hbm [shape: bf16[128,256], index: 5, kind: input, shape index: {}]   ;;  %s762_s6 = inlined_call_operand.vmem [shape: f32[1,256], index: 6, kind: input, shape index: {}]   ;;  %s763_s7 = inlined_call_operand.hbm [shape: f32[8,256], index: 7, kind: output, shape index: {}]  }
   0x1   :  { %13 = vsyncpa [#allocation6], 0 }
   0x2   :  { %14 = vsyncpa [#allocation9], 0 }
   0x3   :  { %15 = vsyncpa [#allocation4], 0  ;;  %s629_s24 = smov [#allocation5]   ;;  %s511_s28 = scalar_lea.hbm %s757_s1, 256 }
   0x4   :  { %s31_s25 = sshll.u32 %s629_s24, 4  ;;  %p512_p0 = scmp.ne.s32.totalorder %s757_s1, %s511_s28  ;;  %s32_s25 = int_to_ptr.vmem [resolvable:$true] %s31_s25 }
   0x5   :  { %p515_p1 = scmp.lt.u32.totalorder %s511_s28, %s757_s1 }
   0x7   :  { %p517_p2 = pnand %p515_p1, %p512_p0 }
   0x9   :  { %520 = shalt.err (!%p517_p2)
}
   0xa   :  { %s521_s10 = scalar_lea.vmem %s32_s25, 256  ;;  %p526_p4 = scmp.lt.s32.totalorder %s32_s25, %s32_s25 }
   0xb   :  { %p522_p3 = scmp.ne.s32.totalorder %s32_s25, %s521_s10  ;;  %p527_p5 = scmp.lt.s32.totalorder %s521_s10, %s521_s10 }
   0xd   :  { %p528_p6 = por %p527_p5, %p526_p4 }
   0xf   :  { %p529_p7 = pnand %p528_p6, %p522_p3 }
  0x11   :  { %532 = shalt.err (!%p529_p7)
}
  0x12   :  { %s630_s11 = smov 64   ;;  %s631_s12 = smov 4  }
  0x13   :  { %37 = dma.hbm_to_vmem [thread:$0]  %s757_s1, 256, %s32_s25, [#allocation6], %s630_s11, %s630_s11, %s631_s12  }
  0x14   :  { %s632_s15 = smov [#allocation2]   ;;  %s633_s17 = smov [#allocation7]  }
  0x15   :  { %s22_s16 = sshll.u32 %s632_s15, 4  ;;  %s45_s18 = sshll.u32 %s633_s17, 4  ;;  %s23_s16 = int_to_ptr.vmem [resolvable:$true] %s22_s16  ;;  %s46_s18 = int_to_ptr.vmem [resolvable:$true] %s45_s18 }
  0x16   :  { %s533_s21 = scalar_lea.hbm %s756_s0, 128 }
  0x17   :  { %p534_p8 = scmp.ne.s32.totalorder %s756_s0, %s533_s21  ;;  %p537_p9 = scmp.lt.u32.totalorder %s533_s21, %s756_s0 }
  0x19   :  { %p539_p10 = pnand %p537_p9, %p534_p8 }
  0x1b   :  { %542 = shalt.err (!%p539_p10)
}
  0x1c   :  { %s543_s1 = scalar_lea.vmem %s23_s16, 128  ;;  %p548_p12 = scmp.lt.s32.totalorder %s23_s16, %s23_s16 }
  0x1d   :  { %p544_p11 = scmp.ne.s32.totalorder %s23_s16, %s543_s1  ;;  %p549_p13 = scmp.lt.s32.totalorder %s543_s1, %s543_s1 }
  0x1f   :  { %p550_p0 = por %p549_p13, %p548_p12 }
  0x21   :  { %p551_p1 = pnand %p550_p0, %p544_p11 }
  0x23   :  { %554 = shalt.err (!%p551_p1)
}
  0x24   :  { %25 = dma.hbm_to_vmem [thread:$0]  %s756_s0, 128, %s23_s16, [#allocation3]  }
  0x25   :  { %s555_s30 = scalar_lea.hbm %s759_s3, 512 }
  0x26   :  { %p556_p2 = scmp.ne.s32.totalorder %s759_s3, %s555_s30  ;;  %p559_p3 = scmp.lt.u32.totalorder %s555_s30, %s759_s3 }
  0x28   :  { %p561_p4 = pnand %p559_p3, %p556_p2 }
  0x2a   :  { %564 = shalt.err (!%p561_p4)
}
  0x2b   :  { %s565_s14 = scalar_lea.vmem %s46_s18, 512  ;;  %p570_p6 = scmp.lt.s32.totalorder %s46_s18, %s46_s18 }
  0x2c   :  { %p566_p5 = scmp.ne.s32.totalorder %s46_s18, %s565_s14  ;;  %p571_p7 = scmp.lt.s32.totalorder %s565_s14, %s565_s14 }
  0x2e   :  { %p572_p8 = por %p571_p7, %p570_p6 }
  0x30   :  { %p573_p9 = pnand %p572_p8, %p566_p5 }
  0x32   :  { %576 = shalt.err (!%p573_p9)
}
  0x33   :  { %51 = dma.hbm_to_vmem [thread:$0]  %s759_s3, 512, %s46_s18, [#allocation6], %s630_s11, %s630_s11, %s631_s12  }
  0x34   :  { %s634_s16 = smov [#allocation8]   ;;  %s577_s21 = scalar_lea.hbm %s761_s5, 2048 }
  0x35   :  { %s59_s17 = sshll.u32 %s634_s16, 4  ;;  %p578_p10 = scmp.ne.s32.totalorder %s761_s5, %s577_s21  ;;  %s60_s17 = int_to_ptr.vmem [resolvable:$true] %s59_s17 }
  0x36   :  { %p581_p11 = scmp.lt.u32.totalorder %s577_s21, %s761_s5 }
  0x38   :  { %p583_p12 = pnand %p581_p11, %p578_p10 }
  0x3a   :  { %586 = shalt.err (!%p583_p12)
}
  0x3b   :  { %s587_s1 = scalar_lea.vmem %s60_s17, 2048  ;;  %p592_p0 = scmp.lt.s32.totalorder %s60_s17, %s60_s17 }
  0x3c   :  { %p588_p13 = scmp.ne.s32.totalorder %s60_s17, %s587_s1  ;;  %p593_p1 = scmp.lt.s32.totalorder %s587_s1, %s587_s1 }
  0x3e   :  { %p594_p2 = por %p593_p1, %p592_p0 }
  0x40   :  { %p595_p3 = pnand %p594_p2, %p588_p13 }
  0x42   :  { %598 = shalt.err (!%p595_p3)
}
  0x43   :  { %s635_s3 = smov 128   ;;  %s636_s11 = smov 8  }
  0x44   :  { %65 = dma.hbm_to_vmem [thread:$0]  %s761_s5, 2048, %s60_s17, [#allocation9], %s635_s3, %s635_s3, %s636_s11  }
  0x45   :  { %621 = dma.done.wait [#allocation3], 128  }
  0x46   :  { %622 = vsyncadd [#allocation3], 4294967168 }
  0x47   :  { %623 = dma.done.wait [#allocation6], 768  }
  0x48   :  { %624 = vsyncadd [#allocation6], 4294966528 }
  0x49   :  { %625 = dma.done.wait [#allocation9], 2048  }
  0x4a   :  { %626 = vsyncadd [#allocation9], 4294965248  ;;  %v637_v0 = vmov 0.0   ;;  %vm638_vm0 = vmmov 0   ;;  %v481_v1 = vld [vmem:[#allocation5] sm:$0xff]   ;;  %v482_v2 = vld [vmem:[#allocation5 + $0x8] sm:$0xff]   ;;  %v259_v44 = vlaneseq }
  0x4b   :  { %449 = vmatprep.subr.bf16.mxu1 %v637_v0  ;;  %453 = vmatprep.mubr.msk.bf16.mxu1 %vm638_vm0, %v637_v0  ;;  %v81_v3 = vld [vmem:[#allocation2] sm:$0xff]  ;;  %v483_v4 = vld [vmem:[#allocation7] sm:$0xff]   ;;  %vm106_vm1 = vcmask 261120   ;;  %v485_v7 = vld [vmem:[#allocation7 + $0x10] sm:$0xff]   ;;  %vm193_vm3 = vcmask 523264   ;;  %v639_v34 = vmov 0  }
  0x4c   :  { %450 = vmatpush3.bf16.msra.mxu1 %v481_v1  ;;  %v82_v5 = vpack.c.bf16 %v81_v3, %v81_v3  ;;  %v484_v6 = vld [vmem:[#allocation7 + $0x8] sm:$0xff]   ;;  %v486_v8 = vld [vmem:[#allocation7 + $0x18] sm:$0xff]   ;;  %381 = vmatprep.mubr.bf16.mxu0 %v639_v34  ;;  %v260_v45 = vshrl.u32 %v259_v44, 7 }
  0x4d   :  { %451 = vmatprep.subr.bf16.mxu1 %v637_v0  ;;  %v487_v9 = vld [vmem:[#allocation8 + $0x4] ss:$8 sps:$4 sm:$0xff]   ;;  %v489_v10 = vld [vmem:[#allocation8] ss:$8 sps:$4 sm:$0xff]   ;;  %v490_v11 = vld [vmem:[#allocation8 + $0x14] ss:$8 sps:$4 sm:$0xff]  }
  0x4e   :  { %349 = vmatprep.subr.bf16.mxu0 %v487_v9  ;;  %v492_v12 = vld [vmem:[#allocation8 + $0x10] ss:$8 sps:$4 sm:$0xff]   ;;  %v493_v13 = vld [vmem:[#allocation8 + $0x24] ss:$8 sps:$4 sm:$0xff]   ;;  %v495_v14 = vld [vmem:[#allocation8 + $0x20] ss:$8 sps:$4 sm:$0xff]  }
  0x4f   :  { %350 = vmatpush1.bf16.msra.mxu0 %v489_v10  ;;  %v496_v15 = vld [vmem:[#allocation8 + $0x34] ss:$8 sps:$4 sm:$0xff]   ;;  %v498_v16 = vld [vmem:[#allocation8 + $0x30] ss:$8 sps:$4 sm:$0xff]   ;;  %v499_v17 = vld [vmem:[#allocation8 + $0x44] ss:$8 sps:$4 sm:$0xff]  }
  0x50   :  { %452 = vmatpush3.bf16.msra.mxu1 %v482_v2  ;;  %351 = vmatprep.subr.bf16.mxu0 %v490_v11  ;;  %v501_v18 = vld [vmem:[#allocation8 + $0x40] ss:$8 sps:$4 sm:$0xff]   ;;  %v502_v19 = vld [vmem:[#allocation8 + $0x54] ss:$8 sps:$4 sm:$0xff]   ;;  %v504_v20 = vld [vmem:[#allocation8 + $0x50] ss:$8 sps:$4 sm:$0xff]  }
  0x51   :  { %457 = vmatprep.subr.bf16.mxu1 %v637_v0  ;;  %v415_v21 = vld [vmem:[%s758_s2] ss:$0 sm:$0xff]  ;;  %v505_v30 = vld [vmem:[#allocation8 + $0x64] ss:$8 sps:$4 sm:$0xff]   ;;  %v508_v32 = vld [vmem:[#allocation8 + $0x74] ss:$8 sps:$4 sm:$0xff]  }
  0x52   :  { %v507_v31 = vld [vmem:[#allocation8 + $0x60] ss:$8 sps:$4 sm:$0xff]   ;;  %v510_v33 = vld [vmem:[#allocation8 + $0x70] ss:$8 sps:$4 sm:$0xff]   ;;  %v261_v46 = vsub.s32 0, %v260_v45  ;;  %v265_v48 = vsub.s32 1, %v260_v45 }
  0x53   :  { %454 = vmatmul.mubr.msk.bf16.vlgmr.msra.gmra.mrb[0].mxu1 %vm106_vm1, %v82_v5  ;;  %352 = vmatpush1.bf16.msra.mxu0 %v492_v12  ;;  %v419_v35 = vld [vmem:[%s760_s4] ss:$0 sm:$0xff]  ;;  %s640_s4 = smov [#allocation10]  }
  0x54   :  { %458 = vmatpush3.bf16.msra.mxu1 %v483_v4  ;;  %465 = vmatprep.mubr.msk.bf16.mxu1 %vm638_vm0, %v637_v0  ;;  %v257_v47 = vld [vmem:[%s762_s6] sm:$0x3]  ;;  %s404_s30 = sshll.u32 %s640_s4, 4  ;;  %s405_s30 = int_to_ptr.vmem [resolvable:$true] %s404_s30 }
  0x55   :  { %459 = vmatprep.subr.bf16.mxu1 %v637_v0  ;;  %353 = vmatprep.subr.bf16.mxu0 %v493_v13  ;;  %v262_v49 = vrot.slane %v257_v47, %v261_v46  ;;  %v266_v50 = vrot.slane %v257_v47, %v265_v48  ;;  %s599_s6 = scalar_lea.vmem %s405_s30, 256  ;;  %p604_p5 = scmp.lt.s32.totalorder %s405_s30, %s405_s30 }
  0x56   :  { %p600_p4 = scmp.ne.s32.totalorder %s405_s30, %s599_s6  ;;  %p605_p6 = scmp.lt.s32.totalorder %s599_s6, %s599_s6 }
  0x57   :  { %354 = vmatpush1.bf16.msra.mxu0 %v495_v14 }
  0x58   :  { %460 = vmatpush3.bf16.msra.mxu1 %v484_v6  ;;  %355 = vmatprep.subr.bf16.mxu0 %v496_v15  ;;  %p606_p7 = por %p605_p6, %p604_p5 }
  0x59   :  { %461 = vmatprep.subr.bf16.mxu1 %v637_v0 }
  0x5a   :  { %p607_p8 = pnand %p606_p7, %p600_p4 }
  0x5b   :  { %356 = vmatpush1.bf16.msra.mxu0 %v498_v16 }
  0x5c   :  { %462 = vmatpush3.bf16.msra.mxu1 %v485_v7  ;;  %357 = vmatprep.subr.bf16.mxu0 %v499_v17 }
  0x5d   :  { %463 = vmatprep.subr.bf16.mxu1 %v637_v0 }
  0x5f   :  { %358 = vmatpush1.bf16.msra.mxu0 %v501_v18 }
  0x60   :  { %464 = vmatpush3.bf16.msra.mxu1 %v486_v8  ;;  %359 = vmatprep.subr.bf16.mxu0 %v502_v19 }
  0x63   :  { %360 = vmatpush1.bf16.msra.mxu0 %v504_v20 }
  0x64   :  { %361 = vmatprep.subr.bf16.mxu0 %v505_v30 }
  0x67   :  { %362 = vmatpush1.bf16.msra.mxu0 %v507_v31 }
  0x68   :  { %363 = vmatprep.subr.bf16.mxu0 %v508_v32 }
  0x6b   :  { %364 = vmatpush1.bf16.msra.mxu0 %v510_v33 }
 0x126   :  { %v144_v22 = vpop.f32.mrb[0].mxu1 }
 0x127   :  { %v145_v23 = vadd.f32 %v415_v21, %v144_v22  ;;  %v455_v24 = vpop.f32.mrb[1].mxu1 }
 0x128   :  { %v147_v25 = vpop.f32.mrb[2].mxu1 }
 0x129   :  { %vm150_vm2 = vcmp.ge.f32.partialorder %v145_v23, 0.0  ;;  %v151_v26 = vmul.f32 0.01, %v145_v23  ;;  %v456_v27 = vpop.f32.mrb[3].mxu1 }
 0x12b   :  { %v152_v28 = vsel %vm150_vm2, %v145_v23, %v151_v26 }
 0x12c   :  { %v153_v29 = vpack.c.bf16 %v152_v28, %v152_v28 }
 0x12e   :  { %466 = vmatmul.mubr.msk.bf16.vlgmr.msra.gmra.mrb[4].mxu1 %vm193_vm3, %v153_v29 }
 0x201   :  { %v231_v36 = vpop.f32.mrb[4].mxu1 }
 0x202   :  { %v232_v37 = vadd.f32 %v419_v35, %v231_v36  ;;  %v467_v38 = vpop.f32.mrb[5].mxu1 }
 0x203   :  { %v234_v39 = vpop.f32.mrb[6].mxu1 }
 0x204   :  { %vm237_vm4 = vcmp.ge.f32.partialorder %v232_v37, 0.0  ;;  %v238_v40 = vmul.f32 0.01, %v232_v37  ;;  %v468_v41 = vpop.f32.mrb[7].mxu1 }
 0x206   :  { %v239_v42 = vsel %vm237_vm4, %v232_v37, %v238_v40 }
 0x207   :  { %v240_v43 = vpack.c.bf16 %v239_v42, %v239_v42 }
 0x209   :  { %382 = vmatmul.mubr.bf16.vlgmr.msra.gmra.mrb[0].mxu0 %v240_v43 }
 0x2dc   :  { %v383_v51 = vpop.f32.mrb[0].mxu0 }
 0x2dd   :  { %v384_v52 = vadd.f32 %v383_v51, %v262_v49  ;;  %v385_v53 = vpop.f32.mrb[1].mxu0 }
 0x2de   :  { %v386_v54 = vadd.f32 %v385_v53, %v266_v50  ;;  %v387_v55 = vpop.f32.mrb[2].mxu0 }
 0x2df   :  { %vm390_vm5 = vcmp.ge.f32.partialorder %v384_v52, 0.0  ;;  %v392_v56 = vmul.f32 0.01, %v384_v52  ;;  %v388_v57 = vpop.f32.mrb[3].mxu0 }
 0x2e0   :  { %vm391_vm6 = vcmp.ge.f32.partialorder %v386_v54, 0.0  ;;  %v393_v58 = vmul.f32 0.01, %v386_v54 }
 0x2e1   :  { %v394_v59 = vsel %vm390_vm5, %v384_v52, %v392_v56 }
 0x2e2   :  { %v395_v60 = vsel %vm391_vm6, %v386_v54, %v393_v58  ;;  %396 = vst [vmem:[#allocation10] sm:$0xff] %v394_v59 }
 0x2e3   :  { %397 = vst [vmem:[#allocation10 + $0x8] sm:$0xff] %v395_v60 }
 0x2e4   :  { %610 = shalt.err (!%p607_p8)
}
 0x2e5   :  { %s611_s10 = scalar_lea.hbm %s763_s7, 256 }
 0x2e6   :  { %p612_p9 = scmp.ne.s32.totalorder %s763_s7, %s611_s10  ;;  %p615_p10 = scmp.lt.u32.totalorder %s611_s10, %s763_s7 }
 0x2e8   :  { %p617_p11 = pnand %p615_p10, %p612_p9 }
 0x2ea   :  { %620 = shalt.err (!%p617_p11)
}
 0x2eb   :  { %407 = dma.vmem_to_hbm [thread:$0]  %s405_s30, 256, %s763_s7, [#allocation4]  }
 0x2ec   :  { %627 = dma.done.wait [#allocation4], 256  }
 0x2ed   :  { %628 = vsyncadd [#allocation4], 4294967040 }
 0x2ee   :  { %411 = vsyncpa [#allocation3], 1 }
 0x2ef   :  { %412 = vsyncpa [#allocation6], 1 }
 0x2f0   :  { %413 = vsyncpa [#allocation9], 1 }
 0x2f1   :  { %414 = vsyncpa [#allocation4], 1 }

</bundles_post_ra>
